<compile_context>
chip_gen: v5e
topology: v5e:2x2
jax: 0.10.0
libtpu: 0.0.40
codegen_flags: <defaults>
</compile_context>

<pallas_src>
import math

import jax
import jax.numpy as jnp
from jax.experimental import pallas as pl
from jax.experimental.pallas import tpu as pltpu


def _gate_kernel(x_ref, g_ref, o_ref):
    # One VPU multiply per tile; the (1, bl) gate lane-vector broadcasts along
    # the sublane (row) dimension.  Promotion to the output dtype matches the
    # PyTorch `input * weight` semantics.
    o_ref[...] = (x_ref[...] * g_ref[...]).astype(o_ref.dtype)


def _round_up(v, m):
    return (v + m - 1) // m * m


def _cdiv(a, b):
    return (a + b - 1) // b


def _sublane_multiple(itemsize):
    # f32 -> 8 sublanes, bf16 -> 16, int8/fp8 -> 32 (packed sublane layout).
    return {4: 8, 2: 16, 1: 32}.get(itemsize, 8)


def _vmem_limit_bytes():
    """Explicit scoped-VMEM limit, ~3/4 of physical (96 MiB v5e/v6e, 48 MiB v7x)."""
    cap = 64 << 20  # conservative fallback = v7x per-TC physical VMEM
    try:
        info = pltpu.get_tpu_info()
        cap = int(getattr(info, "vmem_capacity_bytes", cap)) or cap
    except Exception:
        pass
    return int(min(cap * 3 // 4, 96 << 20))


def _plan_tiles(M, L, itemsize, budget_bytes):
    """Pick (bm, bl) so 2*(in+out) tiles + 2 gate tiles fit the VMEM budget.

    VMEM-accurate: lanes pad to 128, sublanes pad to the dtype multiple.
    """
    sub = _sublane_multiple(itemsize)

    def lane_bytes(bl):
        return _round_up(bl, 128) * itemsize

    # Preferred: fully lane-dense row blocks (bl = L).
    gate_tile = sub * lane_bytes(L)
    avail = budget_bytes - 2 * gate_tile
    bm = (avail // (4 * lane_bytes(L))) // sub * sub
    if bm >= sub:
        bl = L
        bm = min(bm, _round_up(M, sub))
    else:
        # A single sub-row block of full-width lanes does not fit: tile lanes
        # in multiples of 128 (ragged last lane block is masked by Pallas).
        bm = sub
        bl = (budget_bytes // ((4 * bm + 2 * sub) * itemsize)) // 128 * 128
        bl = max(128, min(bl, _round_up(L, 128)))

    # v7x has 2 TensorCores; guarantee >= 2 "parallel" blocks when splittable.
    if _cdiv(M, bm) * _cdiv(L, bl) == 1:
        if M > sub:
            bm = min(bm, _round_up(_cdiv(M, 2), sub))
        elif bl == L and L >= 256 and L % 128 == 0:
            bl = _round_up(_cdiv(L, 2), 128)
    return bm, bl


def _run_gate(x2d, gate1d):
    """x2d: (M, L).  gate1d: (L,) lane gate, already expanded to lane order."""
    M, L = x2d.shape
    out_dtype = jnp.result_type(x2d.dtype, gate1d.dtype)
    g2d = gate1d.reshape(1, L)

    vmem_limit = _vmem_limit_bytes()
    budget = min(vmem_limit // 2, 12 << 20)
    bm, bl = _plan_tiles(M, L, jnp.dtype(out_dtype).itemsize, budget)
    grid_r, grid_l = _cdiv(M, bm), _cdiv(L, bl)

    bytes_accessed = (M * L * x2d.dtype.itemsize            # read x
                      + M * L * jnp.dtype(out_dtype).itemsize  # write out
                      + L * g2d.dtype.itemsize)             # read gate

    return pl.pallas_call(
        _gate_kernel,
        out_shape=jax.ShapeDtypeStruct((M, L), out_dtype),
        grid_spec=pltpu.PrefetchScalarGridSpec(
            num_scalar_prefetch=0,
            # Lane-block axis outermost so the gate block stays resident in
            # VMEM across the inner row-block sweep (no gate re-DMA).
            grid=(grid_l, grid_r),
            in_specs=[pl.BlockSpec((bm, bl), lambda j, i: (i, j)),
                      pl.BlockSpec((1, bl), lambda j, i: (0, j))],
            out_specs=pl.BlockSpec((bm, bl), lambda j, i: (i, j)),
        ),
        compiler_params=pltpu.CompilerParams(
            dimension_semantics=("parallel", "parallel"),
            vmem_limit_bytes=vmem_limit),
        cost_estimate=pl.CostEstimate(
            flops=M * L, transcendentals=0, bytes_accessed=bytes_accessed),
        # TODO(synk): pass input_output_aliases={0: 0} when the caller can
        # donate x (and dtypes match) to elide the second HBM allocation.
    )(x2d, g2d)


def gate_layer_forward(x, weight, size_mask):
    """Pallas GateLayer: x * weight.view(*size_mask)."""
    size_mask = tuple(size_mask)
    assert len(size_mask) == x.ndim, "size_mask rank must match input rank"
    gated_axes = [i for i, s in enumerate(size_mask) if s != 1]
    # TODO(synk): Resnet_gate only ever gates one axis ((1,-1,1,1) / (1,-1));
    # multi-axis masks have no single-gate-axis mapping and are not covered.
    assert len(gated_axes) == 1, "size_mask must gate exactly one axis"
    axis = gated_axes[0]
    C = x.shape[axis]
    assert weight.shape == (C,), "weight must match the gated axis extent"

    shape = x.shape
    lead = math.prod(shape[:axis])
    trail = math.prod(shape[axis + 1:])

    # Lane-dense slab: (lead, C*trail).  The gate is expanded ONCE here to a
    # (C*trail,) lane vector so in-kernel stores are full-width and unmasked.
    x2d = x.reshape(lead, C * trail)
    gate = weight if trail == 1 else jnp.repeat(weight, trail)
    out = _run_gate(x2d, gate)
    return out.reshape(shape)


if __name__ == "__main__":
    key = jax.random.PRNGKey(0)
    kx, kw, kx2, kw2 = jax.random.split(key, 4)

    # Conv-feature gate, as GateLayer is used inside Resnet_gate's blocks:
    # NCHW input, per-channel weight, size_mask = (1, -1, 1, 1).
    N, C, H, W = 2, 4, 16, 16
    x = jax.random.normal(kx, (N, C, H, W), jnp.float32)
    weight = 1.0 + 0.1 * jax.random.normal(kw, (C,), jnp.float32)

    out = jax.block_until_ready(gate_layer_forward(x, weight, (1, -1, 1, 1)))
    ref = x * weight.reshape(1, -1, 1, 1)
    assert out.shape == x.shape
    assert jnp.allclose(out, ref, atol=1e-6, rtol=1e-6), \
        f"max abs diff = {jnp.max(jnp.abs(out - ref))}"

    # FC-feature gate: (N, F) input, size_mask = (1, -1).
    F = 32
    x2 = jax.random.normal(kx2, (N, F), jnp.float32)
    w2 = 1.0 + 0.1 * jax.random.normal(kw2, (F,), jnp.float32)
    out2 = jax.block_until_ready(gate_layer_forward(x2, w2, (1, -1)))
    ref2 = x2 * w2.reshape(1, -1)
    assert jnp.allclose(out2, ref2, atol=1e-6, rtol=1e-6), \
        f"max abs diff = {jnp.max(jnp.abs(out2 - ref2))}"

    print("KERNEL_OK")
</pallas_src>

<mosaic_0001>
module attributes {stable_mosaic.version = 11 : i64} {
  func.func @_gate_kernel(%arg0: i32, %arg1: i32, %arg2: memref<8x512xf32, #tpu.memory_space<vmem>>, %arg3: memref<1x512xf32, #tpu.memory_space<vmem>>, %arg4: memref<8x512xf32, #tpu.memory_space<vmem>>) attributes {dimension_semantics = [#tpu.dimension_semantics<parallel>, #tpu.dimension_semantics<parallel>], iteration_bounds = array<i64: 2, 1>, scalar_prefetch = 0 : i64, scratch_operands = 0 : i64, tpu.core_type = #tpu.core_type<tc>, window_params = [{transform_indices = @transform_0, window_bounds = array<i64: 8, 512>}, {transform_indices = @transform_1, window_bounds = array<i64: 1, 512>}, {transform_indices = @transform_2, window_bounds = array<i64: 8, 512>}]} {
    %c0 = arith.constant 0 : index
    %c0_0 = arith.constant 0 : index
    %0 = vector.load %arg2[%c0, %c0_0] : memref<8x512xf32, #tpu.memory_space<vmem>>, vector<8x512xf32>
    %c0_1 = arith.constant 0 : index
    %c0_2 = arith.constant 0 : index
    %1 = vector.load %arg3[%c0_1, %c0_2] : memref<1x512xf32, #tpu.memory_space<vmem>>, vector<1x512xf32>
    %2 = vector.broadcast %1 : vector<1x512xf32> to vector<8x512xf32>
    %3 = arith.mulf %0, %2 : vector<8x512xf32>
    %c0_3 = arith.constant 0 : index
    %c0_4 = arith.constant 0 : index
    %4 = vector.load %arg4[%c0_3, %c0_4] : memref<8x512xf32, #tpu.memory_space<vmem>>, vector<8x512xf32>
    tpu.vector_store %arg4[%c0_3, %c0_4], %3 {strides = array<i32>} : memref<8x512xf32, #tpu.memory_space<vmem>>, vector<8x512xf32>,
    return
  }
  func.func @transform_0(%arg0: i32, %arg1: i32) -> (i32, i32) {
    %c0_i32 = arith.constant 0 : i32
    return %arg1, %arg0 : i32, i32
  }
  func.func @transform_1(%arg0: i32, %arg1: i32) -> (i32, i32) {
    %c0_i32 = arith.constant 0 : i32
    %c0_i32_0 = arith.constant 0 : i32
    return %c0_i32, %arg0 : i32, i32
  }
  func.func @transform_2(%arg0: i32, %arg1: i32) -> (i32, i32) {
    %c0_i32 = arith.constant 0 : i32
    return %arg1, %arg0 : i32, i32
  }
}

</mosaic_0001>

<bundles_post_ra>
// kernel: tpu_custom_call.1
= control target key start
LH: loop header
LB: loop body
LE: loop exit
PB: predicated region body
PF: predicated region fallthrough
CT: control target
= control target key end

     0   :  { %7 = vsyncpa [#allocation3], 0  ;;  %s812_s0 = inlined_call_operand.hbm [shape: f32[2,1024], index: 0, kind: input, shape index: {}]   ;;  %s813_s1 = inlined_call_operand.hbm [shape: f32[1,1024], index: 1, kind: input, shape index: {}]   ;;  %s814_s2 = inlined_call_operand.hbm [shape: f32[2,1024], index: 2, kind: output, shape index: {}]  }
   0x1   :  { %9 = vsyncpa [#allocation3 + $0x1], 0 }
   0x2   :  { %10 = vsyncpa [#allocation6], 0 }
   0x3   :  { %12 = vsyncpa [#allocation6 + $0x1], 0 }
   0x4   :  { %13 = vsyncpa [#allocation4], 0 }
   0x5   :  { %15 = vsyncpa [#allocation4 + $0x1], 0  ;;  %s660_s9 = smov 0   ;;  %s662_s10 = smov 0  }
   0x6   :  { %s664_s11 = smov 0   ;;  %s666_s12 = smov 0  }
   0x7   :  { %s668_s13 = smov 0   ;;  %s670_s14 = smov 0  }
   0x8 LB: > { %s420_s15 = sadd.s32 4294967295, %s637_s14   ;;  %s421_s16 = sadd.s32 4294967294, %s637_s14   ;;  %s637_s14 = sphi %s670_s14, %s21_s14   ;;  %s633_s13 = sphi %s668_s13, %s823_s13   ;;  %s629_s12 = sphi %s666_s12, %s822_s12   ;;  %s625_s11 = sphi %s664_s11, %s821_s11   ;;  %s621_s10 = sphi %s662_s10, %s820_s10   ;;  %s617_s9 = sphi %s660_s9, %s819_s9  }
   0x9   : > { %s33_s17 = sadd.s32 1, %s633_s13  ;;  %s42_s18 = sadd.s32 1, %s625_s11 }
   0xa   : > { %p35_p0 = scmp.ge.s32.totalorder %s33_s17, 2  ;;  %p49_p1 = scmp.ne.s32.totalorder %s625_s11, %s621_s10 }
   0xb   : > { %p50_p2 = scmp.eq.s32.totalorder %s637_s14, 0  ;;  %p55_p3 = scmp.ne.s32.totalorder %s621_s10, %s617_s9 }
   0xc   : > { %s825_s17 = smov (%p35_p0, %s33_s17), 0  ;;  %p56_p5 = scmp.eq.s32.totalorder %s420_s15, 0 }
   0xd   : > { %p701_p4 = por %p50_p2, %p49_p1  ;;  %s38_s20 = ssub.s32 %s633_s13, %s825_s17 }
   0xe   : > { %p107_p6 = scmp.eq.s32.totalorder %s420_s15, 1  ;;  %p40_p7 = scmp.eq.s32.totalorder %s38_s20, 0 }
   0xf   : > { %p707_p8 = por %p56_p5, %p55_p3  ;;  %p113_p10 = scmp.eq.s32.totalorder %s421_s16, 1 }
  0x10   : > { %p711_p9 = por %p107_p6, %p49_p1  ;;  %p423_p12 = scmp.ge.s32.totalorder %s637_s14, 2 }
  0x11   : > { %s716_s23 = scalar_select %p40_p7, %s625_s11, %s42_s18  }
  0x12   : > { %p718_p11 = por %p113_p10, %p55_p3  ;;  %129 = sbr.rel (%p423_p12) target bundleno = 38 (0x26), region = 16 }
  0x17   : > { %132 = sbr.rel (!%p701_p4) target bundleno = 33 (0x21), region = 20  ;;  %s133_s25 = sand.u32 (%p701_p4), 1, %s625_s11  }
  0x18   : > { %s424_s26 = sshll.u32 (%p701_p4), %s133_s25, 5  ;;  %s134_s27 = scalar_lea.sflag (%p701_p4), [#allocation3], %s133_s25 }
  0x19   : > { %s137_s28 = scalar_lea.vmem (%p701_p4), [#allocation2], %s424_s26 }
  0x1c   : > { %145 = vsyncadd %s134_s27, 384  ;;  %s438_s29 = sshll.u32 %s633_s13, 3  ;;  %s154_s30 = sshll.u32 %s137_s28, 4  ;;  %s155_s30 = int_to_ptr.vmem [resolvable:$true] %s154_s30 }
  0x1d   : > { %s150_s5 = scalar_lea.hbm %s812_s0, %s438_s29  ;;  %s639_s7 = smov 256  }
  0x1e   : > { %s152_s6 = sshll.u32 %s150_s5, 4  ;;  %s640_s8 = smov 128   ;;  %s153_s6 = int_to_ptr.hbm [resolvable:$true] %s152_s6 }
  0x1f   : > { %s641_s15 = smov 8  }
  0x20   : > { %160 = dma.hbm_to_vmem [thread:$0]  %s153_s6, 128, %s155_s30, %s134_s27, %s639_s7, %s640_s8, %s641_s15  }
  0x21 PF: > { %s164_s16 = sand.u32 1, %s625_s11   ;;  %s428_s18 = sshll.u32 %s633_s13, 2 }
  0x22   : > { %s427_s20 = sshll.u32 %s164_s16, 2  ;;  %s172_s28 = scalar_lea.hbm %s813_s1, %s428_s18 }
  0x23   : > { %s174_s3 = sshll.u32 %s172_s28, 4  ;;  %s168_s29 = scalar_lea.vmem [#allocation5], %s427_s20  ;;  %s175_s3 = int_to_ptr.hbm [resolvable:$true] %s174_s3 }
  0x24   : > { %s176_s4 = sshll.u32 %s168_s29, 4  ;;  %s165_s5 = scalar_lea.sflag [#allocation6], %s164_s16  ;;  %s177_s4 = int_to_ptr.vmem [resolvable:$true] %s176_s4 }
  0x25   : > { %440 = dma.hbm_to_vmem [thread:$0]  (%p701_p4), %s175_s3, 64, %s177_s4, %s165_s5  }
  0x26 PF: > { %p429_p13 = scmp.ge.s32.totalorder %s637_s14, 1  ;;  %p181_p0 = scmp.lt.s32.totalorder %s637_s14, 3 }
  0x28   : > { %p182_p1 = pnand %p429_p13, %p181_p0 }
  0x29   : > { %s742_s27 = sand.u32 (!%p182_p1), 1, %s621_s10  }
  0x2a   : > { %185 = sbr.rel (%p182_p1) target bundleno = 81 (0x51), region = 28  ;;  %s430_s30 = sshll.u32 (!%p182_p1), %s742_s27, 5 }
  0x2b   : > { %s188_s6 = scalar_lea.sflag (!%p182_p1), [#allocation3], %s742_s27  ;;  %s748_s7 = scalar_lea.vmem (!%p182_p1), [#allocation2], %s430_s30 }
  0x2f   : > { %604 = dma.done.wait (%p707_p8), %s188_s6, 512  }
  0x30   : > { %606 = vsyncadd (%p707_p8), %s188_s6, 4294966784  ;;  %s431_s19 = sshll.u32 %s742_s27, 2  ;;  %s198_s8 = scalar_lea.sflag [#allocation6], %s742_s27 }
  0x31   : > { %s201_s15 = scalar_lea.vmem [#allocation5], %s431_s19 }
  0x32   : > { %608 = dma.done.wait (%p707_p8), %s198_s8, 64  }
  0x33   : > { %610 = vsyncadd (%p707_p8), %s198_s8, 4294967232  ;;  %v243_v0 = vld [vmem:[%s201_s15] sm:$0xf]  ;;  %vm252_vm0 = vcmask 1041408   ;;  %vm254_vm1 = vcmask 1045508   ;;  %vm258_vm2 = vcmask 1043458  }
  0x34   : > { %v245_v1 = vperm.slane %v243_v0, 0  ;;  %v246_v2 = vperm.slane %v243_v0, 1  ;;  %v247_v3 = vperm.slane %v243_v0, 2  ;;  %v248_v4 = vperm.slane %v243_v0, 3  ;;  %v239_v8 = vld [vmem:[%s748_s7] sm:$0xff]  ;;  %v240_v14 = vld [vmem:[%s748_s7 + $0x8] sm:$0xff] }
  0x35   : > { %vm260_vm3 = vcmask 1045504   ;;  %vm262_vm4 = vcmask 1045506   ;;  %vm256_vm5 = vcmask 1043456   ;;  %v241_v20 = vld [vmem:[%s748_s7 + $0x10] sm:$0xff]  ;;  %s227_s21 = scalar_lea.vmem [#allocation7], %s430_s30  ;;  %v242_v26 = vld [vmem:[%s748_s7 + $0x18] sm:$0xff] }
  0x36   : > { %v249_v5 = vrot.slane %v246_v2, 6  ;;  %v250_v6 = vrot.slane %v247_v3, 4  ;;  %v251_v7 = vrot.slane %v248_v4, 2  ;;  %s286_s16 = scalar_lea.sflag [#allocation4], %s742_s27 }
  0x38   : > { %v253_v9 = vsel %vm252_vm0, %v245_v1, %v249_v5  ;;  %v255_v10 = vsel %vm254_vm1, %v250_v6, %v251_v7  ;;  %v259_v11 = vsel %vm258_vm2, %v245_v1, %v249_v5  ;;  %v261_v12 = vsel %vm260_vm3, %v251_v7, %v250_v6 }
  0x39   : > { %v257_v13 = vsel %vm256_vm5, %v253_v9, %v255_v10  ;;  %v263_v15 = vsel %vm262_vm4, %v259_v11, %v261_v12  ;;  %v265_v16 = vsel %vm254_vm1, %v245_v1, %v249_v5  ;;  %v266_v17 = vsel %vm252_vm0, %v250_v6, %v251_v7 }
  0x3a   : > { %v277_v18 = vmul.f32 %v257_v13, %v239_v8  ;;  %v264_v19 = vrot.slane %v263_v15, 2  ;;  %v267_v21 = vsel %vm256_vm5, %v266_v17, %v265_v16  ;;  %v269_v22 = vsel %vm260_vm3, %v249_v5, %v245_v1 }
  0x3b   : > { %v268_v23 = vrot.slane %v267_v21, 4  ;;  %v270_v24 = vsel %vm258_vm2, %v250_v6, %v251_v7 }
  0x3c   : > { %281 = vst [vmem:[%s227_s21] sm:$0xff] %v277_v18  ;;  %v278_v25 = vmul.f32 %v264_v19, %v240_v14  ;;  %v271_v27 = vsel %vm262_vm4, %v270_v24, %v269_v22 }
  0x3d   : > { %v279_v28 = vmul.f32 %v268_v23, %v241_v20  ;;  %v272_v29 = vrot.slane %v271_v27, 6  ;;  %292 = sbr.rel (!%p711_p9) target bundleno = 81 (0x51), region = 40 }
  0x3e   : > { %282 = vst [vmem:[%s227_s21 + $0x8] sm:$0xff] %v278_v25 }
  0x3f   : > { %283 = vst [vmem:[%s227_s21 + $0x10] sm:$0xff] %v279_v28  ;;  %v280_v30 = vmul.f32 %v272_v29, %v242_v26 }
  0x41   : > { %284 = vst [vmem:[%s227_s21 + $0x18] sm:$0xff] %v280_v30 }
  0x42   : > { %300 = vsyncadd %s286_s16, 384  ;;  %s439_s18 = sshll.u32 %s629_s12, 3  ;;  %s307_s20 = sshll.u32 %s227_s21, 4  ;;  %s308_s20 = int_to_ptr.vmem [resolvable:$true] %s307_s20 }
  0x43   : > { %s305_s28 = scalar_lea.hbm %s814_s2, %s439_s18  ;;  %s571_s22 = scalar_lea.hbm %s814_s2, 16 }
  0x44   : > { %s309_s3 = sshll.u32 %s305_s28, 4  ;;  %s310_s3 = int_to_ptr.hbm [resolvable:$true] %s309_s3 }
  0x45   : > { %s567_s29 = sshra.s32 %s310_s3, 4  ;;  %s568_s29 = int_to_ptr.hbm [resolvable:$true] %s567_s29 }
  0x46   : > { %s569_s4 = scalar_lea.hbm %s568_s29, 8  ;;  %p572_p3 = scmp.lt.s32.totalorder %s568_s29, %s814_s2 }
  0x47   : > { %p570_p2 = scmp.ne.s32.totalorder %s568_s29, %s569_s4  ;;  %p573_p4 = scmp.lt.s32.totalorder %s571_s22, %s569_s4 }
  0x49   : > { %p574_p5 = por %p573_p4, %p572_p3 }
  0x4b   : > { %p575_p6 = pnand %p574_p5, %p570_p2 }
  0x4d   : > { %578 = shalt.err (!%p575_p6)
}
  0x4e   : > { %s642_s12 = smov 128   ;;  %s643_s7 = smov 256  }
  0x4f   : > { %s644_s19 = smov 8  }
  0x50   : > { %315 = dma.vmem_to_hbm [thread:$0]  %s308_s20, 128, %s310_s3, %s286_s16, %s642_s12, %s643_s7, %s644_s19  }
  0x51 PF: > { %s324_s8 = sand.u32 1, %s617_s9   ;;  %p445_p7 = pnand %p423_p12, %p718_p11 }
  0x52   : > { %s325_s15 = scalar_lea.sflag [#allocation4], %s324_s8 }
  0x53   : > { %p446_p8 = pneg %p445_p7 }
  0x55   : > { %612 = dma.done.wait (%p446_p8), %s325_s15, 512  }
  0x56   : > { %614 = vsyncadd (%p446_p8), %s325_s15, 4294966784  ;;  %s21_s14 = sadd.s32 1, %s637_s14   ;;  %s819_s9 = smov %s621_s10 }
  0x57   : > { %p18_p9 = scmp.ge.s32.totalorder %s21_s14, 4   ;;  %s820_s10 = smov %s625_s11 }
  0x58   : > { %s821_s11 = smov %s716_s23  ;;  %s822_s12 = smov %s633_s13 }
  0x59   : > { %s823_s13 = smov %s825_s17  ;;  %20 = sbr.rel (!%p18_p9) target bundleno = 8 (0x8), region = 86 }
  0x5e   :  { %331 = vsyncpa [#allocation3], 1 }
  0x5f   :  { %333 = vsyncpa [#allocation3 + $0x1], 1 }
  0x60   :  { %334 = vsyncpa [#allocation6], 1 }
  0x61   :  { %336 = vsyncpa [#allocation6 + $0x1], 1 }
  0x62   :  { %337 = vsyncpa [#allocation4], 1 }
  0x63   :  { %339 = vsyncpa [#allocation4 + $0x1], 1 }

</bundles_post_ra>
